<compile_context>
chip_gen: v7x
topology: tpu7x:2x2x1
jax: 0.10.0
libtpu: 0.0.40
codegen_flags: <defaults>
</compile_context>

<pallas_src>
import functools

import jax
import jax.numpy as jnp
import numpy as np
from jax.experimental import pallas as pl
from jax.experimental.pallas import tpu as pltpu

_LANE = 128
_SUBLANE = 8
_MAX_TILE_ROWS = 1024  # 1024 x 128 f32 = 512 KiB per tile buffer


def _round_up(x: int, m: int) -> int:
    return ((x + m - 1) // m) * m


def _masked_mse_kernel(pid_ref, pred_ref, targ_ref, sse_ref, cnt_ref):
    """One grid step: accumulate masked SSE / valid-count for one tile.

    pred_ref / targ_ref : (groups, 8, 128) tile belonging to a single pair.
    sse_ref / cnt_ref   : (1, 8, 128) resident output block of that pair.
    """
    i = pl.program_id(0)
    cur = pid_ref[i]
    prev = pid_ref[jnp.maximum(i - 1, 0)]

    # First tile of a new pair (pair ids are contiguous & non-decreasing):
    # reset that pair's accumulator block.
    @pl.when(jnp.logical_or(i == 0, cur != prev))
    def _():
        sse_ref[...] = jnp.zeros_like(sse_ref)
        cnt_ref[...] = jnp.zeros_like(cnt_ref)

    p = pred_ref[...].astype(jnp.float32)
    t = targ_ref[...].astype(jnp.float32)
    mask = jnp.logical_not(jnp.isnan(t))
    diff = jnp.where(mask, p - t, jnp.float32(0.0))
    # Reduce only over the leading (vreg-group) axis: pure VPU adds; no
    # cross-lane / XLU work in the hot loop.
    sse_ref[...] += jnp.sum(diff * diff, axis=0, keepdims=True)
    cnt_ref[...] += jnp.sum(mask.astype(jnp.int32), axis=0, keepdims=True)


@functools.partial(jax.jit, static_argnames=("tile_rows",))
def _dict_loss_impl(preds, targs, weights, tile_rows):
    num_pairs = len(preds)
    chunk = tile_rows * _LANE

    # Common buffer dtype (kept narrow: bf16 stays bf16; the f32 upcast happens
    # inside the kernel).  NaN padding requires a floating dtype.
    dtype = jnp.result_type(*preds, *targs)
    if not jnp.issubdtype(dtype, jnp.floating):
        dtype = jnp.float32

    def build(arrs, pad_value):
        segs = []
        for a in arrs:
            flat = a.reshape(-1).astype(dtype)
            n = flat.shape[0]
            pad = _round_up(max(n, 1), chunk) - n
            segs.append(flat)
            if pad:
                segs.append(jnp.full((pad,), pad_value, dtype=dtype))
        return jnp.concatenate(segs).reshape(-1, _SUBLANE, _LANE)

    pred3d = build(preds, 0)
    targ3d = build(targs, jnp.nan)  # NaN padding -> masked out in the kernel

    tiles_per_pair = [
        _round_up(max(int(np.prod(a.shape)), 1), chunk) // chunk for a in preds
    ]
    pair_id = jnp.asarray(
        np.concatenate(
            [np.full(t, i, dtype=np.int32) for i, t in enumerate(tiles_per_pair)]
        )
    )
    total_tiles = int(sum(tiles_per_pair))
    groups_per_tile = tile_rows // _SUBLANE

    sse_out, cnt_out = pl.pallas_call(
        _masked_mse_kernel,
        out_shape=(
            jax.ShapeDtypeStruct((num_pairs, _SUBLANE, _LANE), jnp.float32),
            jax.ShapeDtypeStruct((num_pairs, _SUBLANE, _LANE), jnp.int32),
        ),
        grid_spec=pltpu.PrefetchScalarGridSpec(
            num_scalar_prefetch=1,
            grid=(total_tiles,),
            in_specs=[
                pl.BlockSpec((groups_per_tile, _SUBLANE, _LANE),
                             lambda i, pid: (i, 0, 0)),
                pl.BlockSpec((groups_per_tile, _SUBLANE, _LANE),
                             lambda i, pid: (i, 0, 0)),
            ],
            out_specs=(
                pl.BlockSpec((1, _SUBLANE, _LANE),
                             lambda i, pid: (pid[i], 0, 0)),
                pl.BlockSpec((1, _SUBLANE, _LANE),
                             lambda i, pid: (pid[i], 0, 0)),
            ),
        ),
        # Output blocks are carried across the (only) grid axis -> must stay
        # "arbitrary".
        # TODO(synk): add a leading size-2 "parallel" axis with per-core
        # partial (sse, cnt) outputs to use both TensorCores on v7x.
        compiler_params=pltpu.CompilerParams(
            dimension_semantics=("arbitrary",)
        ),
    )(pair_id, pred3d, targ3d)

    # Tiny final reductions + per-pair weighting / skip logic, all fused here.
    sse = jnp.sum(sse_out, axis=(1, 2))                    # (num_pairs,) f32
    cnt = jnp.sum(cnt_out, axis=(1, 2))                    # (num_pairs,) int32
    has_valid = cnt > 0
    mse = jnp.where(has_valid, sse / jnp.maximum(cnt.astype(jnp.float32), 1.0), 0.0)
    loss = jnp.sum(jnp.where(has_valid, weights * mse, 0.0))
    weight_sum = jnp.sum(jnp.where(has_valid, weights, 0.0))
    return loss / weight_sum


def dict_loss(inputs, targets, weights=None):
    """JAX/Pallas equivalent of DictLoss(torch.nn.MSELoss(), weights)."""
    if len(targets) == 0:
        raise ValueError(
            "get empty target! plz check your configs, especially "
            "RawGraphParser.targets"
        )
    weights = weights or {}
    keys = [k for k in targets if k in inputs]
    if not keys:
        raise ValueError("no overlapping keys between inputs and target")
    preds = tuple(jnp.asarray(inputs[k]) for k in keys)
    targs = tuple(jnp.asarray(targets[k]) for k in keys)
    w = jnp.asarray([float(weights.get(k, 1)) for k in keys], dtype=jnp.float32)

    # Static tile choice: big enough to amortize the ~0.35us/step pipeline
    # overhead on large tensors (cap: 1024 rows = 512 KiB f32 per buffer ->
    # ~2 MiB double-buffered, safe within default scoped VMEM on v5e/v6e/v7x),
    # small enough that tiny pairs don't drown in padding, and >= a few tiles
    # per large pair so the DMA/compute pipeline stays full.
    max_rows = max(-(-int(np.prod(p.shape)) // _LANE) for p in preds)
    tile_rows = int(
        min(_MAX_TILE_ROWS,
            max(_SUBLANE, _round_up(-(-max_rows // 4), _SUBLANE)))
    )
    return _dict_loss_impl(preds, targs, w, tile_rows=tile_rows)


def _reference_dict_loss(inputs, targets, weights=None):
    """Pure-jnp reference mirroring the torch semantics."""
    weights = weights or {}
    loss = jnp.float32(0.0)
    weight_sum = jnp.float32(0.0)
    for key, tgt in targets.items():
        if key not in inputs:
            continue
        w = jnp.float32(weights.get(key, 1))
        p = inputs[key].reshape(-1).astype(jnp.float32)
        t = tgt.reshape(-1).astype(jnp.float32)
        mask = jnp.logical_not(jnp.isnan(t))
        cnt = jnp.sum(mask.astype(jnp.float32))
        diff = jnp.where(mask, p - t, 0.0)
        mse = jnp.sum(diff * diff) / jnp.maximum(cnt, 1.0)
        has = cnt > 0
        loss = loss + jnp.where(has, w * mse, 0.0)
        weight_sum = weight_sum + jnp.where(has, w, 0.0)
    return loss / weight_sum


if __name__ == "__main__":
    key = jax.random.PRNGKey(0)
    ks = jax.random.split(key, 10)

    # Dict of (input, target) pairs, mixed shapes, like the torch module.
    inputs = {
        "a": jax.random.normal(ks[0], (2, 16), dtype=jnp.float32),
        "b": jax.random.normal(ks[1], (4, 8, 8), dtype=jnp.float32),
        "c": jax.random.normal(ks[2], (3, 5), dtype=jnp.float32),
        "d": jax.random.normal(ks[3], (24, 256), dtype=jnp.float32),
        "input_only": jax.random.normal(ks[4], (4, 4), dtype=jnp.float32),
    }

    tgt_a = jax.random.normal(ks[5], (2, 16), dtype=jnp.float32)
    tgt_a = tgt_a.at[0, 3].set(jnp.nan).at[1, 7].set(jnp.nan)

    tgt_b = jax.random.normal(ks[6], (4, 8, 8), dtype=jnp.float32)
    tgt_b = jnp.where(jax.random.bernoulli(ks[7], 0.2, (4, 8, 8)), jnp.nan, tgt_b)

    tgt_c = jnp.full((3, 5), jnp.nan, dtype=jnp.float32)  # all-NaN -> skipped

    tgt_d = jax.random.normal(ks[8], (24, 256), dtype=jnp.float32)
    tgt_d = jnp.where(jax.random.bernoulli(ks[9], 0.1, (24, 256)), jnp.nan, tgt_d)

    targets = {
        "a": tgt_a,
        "b": tgt_b,
        "c": tgt_c,
        "d": tgt_d,
        "target_only": jnp.zeros((2, 2), jnp.float32),  # missing in inputs -> skipped
    }
    weights = {"a": 1.0, "b": 0.5, "c": 2.0, "d": 1.5}

    out = dict_loss(inputs, targets, weights)
    out = jax.block_until_ready(out)

    ref = _reference_dict_loss(inputs, targets, weights)
    assert jnp.isfinite(out), "loss is not finite"
    assert jnp.allclose(out, ref, rtol=1e-5, atol=1e-5), (out, ref)

    print("KERNEL_OK")
</pallas_src>

<mosaic_0001>
module attributes {stable_mosaic.version = 11 : i64} {
  func.func @_masked_mse_kernel(%arg0: i32, %arg1: memref<6xi32, #tpu.memory_space<smem>>, %arg2: memref<2x8x128xf32, #tpu.memory_space<vmem>>, %arg3: memref<2x8x128xf32, #tpu.memory_space<vmem>>, %arg4: memref<1x8x128xf32, #tpu.memory_space<vmem>>, %arg5: memref<1x8x128xi32, #tpu.memory_space<vmem>>) attributes {dimension_semantics = [#tpu.dimension_semantics<arbitrary>], iteration_bounds = array<i64: 6>, scalar_prefetch = 1 : i64, scratch_operands = 0 : i64, tpu.core_type = #tpu.core_type<tc>, window_params = [{transform_indices = @transform_0, window_bounds = array<i64: 2, 8, 128>}, {transform_indices = @transform_1, window_bounds = array<i64: 2, 8, 128>}, {transform_indices = @transform_2, window_bounds = array<i64: 1, 8, 128>}, {transform_indices = @transform_3, window_bounds = array<i64: 1, 8, 128>}]} {
    %0 = arith.index_cast %arg0 : i32 to index
    %1 = memref.load %arg1[%0] : memref<6xi32, #tpu.memory_space<smem>>
    %c1_i32 = arith.constant 1 : i32
    %2 = arith.subi %arg0, %c1_i32 : i32
    %c0_i32 = arith.constant 0 : i32
    %3 = arith.maxsi %2, %c0_i32 : i32
    %4 = arith.index_cast %3 : i32 to index
    %5 = memref.load %arg1[%4] : memref<6xi32, #tpu.memory_space<smem>>
    %c0_i32_0 = arith.constant 0 : i32
    %6 = arith.cmpi eq, %arg0, %c0_i32_0 : i32
    %7 = arith.cmpi ne, %1, %5 : i32
    %8 = arith.ori %6, %7 : i1
    %9 = arith.extui %8 : i1 to i32
    %c0_i32_1 = arith.constant 0 : i32
    %10 = arith.cmpi ne, %9, %c0_i32_1 : i32
    scf.if %10 {
      %cst_22 = arith.constant 0.000000e+00 : f32
      %30 = vector.broadcast %cst_22 : f32 to vector<1x8x128xf32>
      %c0_23 = arith.constant 0 : index
      %c0_24 = arith.constant 0 : index
      %c0_25 = arith.constant 0 : index
      %31 = vector.load %arg4[%c0_23, %c0_24, %c0_25] : memref<1x8x128xf32, #tpu.memory_space<vmem>>, vector<1x8x128xf32>
      tpu.vector_store %arg4[%c0_23, %c0_24, %c0_25], %30 {strides = array<i32>} : memref<1x8x128xf32, #tpu.memory_space<vmem>>, vector<1x8x128xf32>,
      %c0_i32_26 = arith.constant 0 : i32
      %32 = vector.broadcast %c0_i32_26 : i32 to vector<1x8x128xi32>
      %c0_27 = arith.constant 0 : index
      %c0_28 = arith.constant 0 : index
      %c0_29 = arith.constant 0 : index
      %33 = vector.load %arg5[%c0_27, %c0_28, %c0_29] : memref<1x8x128xi32, #tpu.memory_space<vmem>>, vector<1x8x128xi32>
      tpu.vector_store %arg5[%c0_27, %c0_28, %c0_29], %32 {strides = array<i32>} : memref<1x8x128xi32, #tpu.memory_space<vmem>>, vector<1x8x128xi32>,
    } else {
    }
    %c0 = arith.constant 0 : index
    %c0_2 = arith.constant 0 : index
    %c0_3 = arith.constant 0 : index
    %11 = vector.load %arg2[%c0, %c0_2, %c0_3] : memref<2x8x128xf32, #tpu.memory_space<vmem>>, vector<2x8x128xf32>
    %c0_4 = arith.constant 0 : index
    %c0_5 = arith.constant 0 : index
    %c0_6 = arith.constant 0 : index
    %12 = vector.load %arg3[%c0_4, %c0_5, %c0_6] : memref<2x8x128xf32, #tpu.memory_space<vmem>>, vector<2x8x128xf32>
    %13 = arith.cmpf one, %12, %12 : vector<2x8x128xf32>
    %cst = arith.constant dense<true> : vector<2x8x128xi1>
    %14 = arith.xori %13, %cst : vector<2x8x128xi1>
    %15 = arith.subf %11, %12 : vector<2x8x128xf32>
    %cst_7 = arith.constant 0.000000e+00 : f32
    %16 = vector.broadcast %cst_7 : f32 to vector<2x8x128xf32>
    %17 = arith.select %14, %15, %16 : vector<2x8x128xi1>, vector<2x8x128xf32>
    %c0_8 = arith.constant 0 : index
    %c0_9 = arith.constant 0 : index
    %c0_10 = arith.constant 0 : index
    %18 = vector.load %arg4[%c0_8, %c0_9, %c0_10] : memref<1x8x128xf32, #tpu.memory_space<vmem>>, vector<1x8x128xf32>
    %19 = arith.mulf %17, %17 : vector<2x8x128xf32>
    %cst_11 = arith.constant dense<0.000000e+00> : vector<8x128xf32>
    %20 = vector.multi_reduction <add>, %19, %cst_11 [0] : vector<2x8x128xf32> to vector<8x128xf32>
    %21 = vector.shape_cast %20 : vector<8x128xf32> to vector<1x8x128xf32>
    %22 = arith.addf %18, %21 : vector<1x8x128xf32>
    %c0_12 = arith.constant 0 : index
    %c0_13 = arith.constant 0 : index
    %c0_14 = arith.constant 0 : index
    %23 = vector.load %arg4[%c0_12, %c0_13, %c0_14] : memref<1x8x128xf32, #tpu.memory_space<vmem>>, vector<1x8x128xf32>
    tpu.vector_store %arg4[%c0_12, %c0_13, %c0_14], %22 {strides = array<i32>} : memref<1x8x128xf32, #tpu.memory_space<vmem>>, vector<1x8x128xf32>,
    %c0_15 = arith.constant 0 : index
    %c0_16 = arith.constant 0 : index
    %c0_17 = arith.constant 0 : index
    %24 = vector.load %arg5[%c0_15, %c0_16, %c0_17] : memref<1x8x128xi32, #tpu.memory_space<vmem>>, vector<1x8x128xi32>
    %25 = arith.extui %14 : vector<2x8x128xi1> to vector<2x8x128xi32>
    %cst_18 = arith.constant dense<0> : vector<8x128xi32>
    %26 = vector.multi_reduction <add>, %25, %cst_18 [0] : vector<2x8x128xi32> to vector<8x128xi32>
    %27 = vector.shape_cast %26 : vector<8x128xi32> to vector<1x8x128xi32>
    %28 = arith.addi %24, %27 : vector<1x8x128xi32>
    %c0_19 = arith.constant 0 : index
    %c0_20 = arith.constant 0 : index
    %c0_21 = arith.constant 0 : index
    %29 = vector.load %arg5[%c0_19, %c0_20, %c0_21] : memref<1x8x128xi32, #tpu.memory_space<vmem>>, vector<1x8x128xi32>
    tpu.vector_store %arg5[%c0_19, %c0_20, %c0_21], %28 {strides = array<i32>} : memref<1x8x128xi32, #tpu.memory_space<vmem>>, vector<1x8x128xi32>,
    return
  }
  func.func @transform_0(%arg0: i32, %arg1: memref<6xi32, #tpu.memory_space<smem>>) -> (i32, i32, i32) {
    %c0_i32 = arith.constant 0 : i32
    %c0_i32_0 = arith.constant 0 : i32
    %c0_i32_1 = arith.constant 0 : i32
    return %arg0, %c0_i32, %c0_i32_0 : i32, i32, i32
  }
  func.func @transform_1(%arg0: i32, %arg1: memref<6xi32, #tpu.memory_space<smem>>) -> (i32, i32, i32) {
    %c0_i32 = arith.constant 0 : i32
    %c0_i32_0 = arith.constant 0 : i32
    %c0_i32_1 = arith.constant 0 : i32
    return %arg0, %c0_i32, %c0_i32_0 : i32, i32, i32
  }
  func.func @transform_2(%arg0: i32, %arg1: memref<6xi32, #tpu.memory_space<smem>>) -> (i32, i32, i32) {
    %0 = arith.index_cast %arg0 : i32 to index
    %1 = memref.load %arg1[%0] : memref<6xi32, #tpu.memory_space<smem>>
    %c0_i32 = arith.constant 0 : i32
    %c0_i32_0 = arith.constant 0 : i32
    %c0_i32_1 = arith.constant 0 : i32
    return %1, %c0_i32, %c0_i32_0 : i32, i32, i32
  }
  func.func @transform_3(%arg0: i32, %arg1: memref<6xi32, #tpu.memory_space<smem>>) -> (i32, i32, i32) {
    %0 = arith.index_cast %arg0 : i32 to index
    %1 = memref.load %arg1[%0] : memref<6xi32, #tpu.memory_space<smem>>
    %c0_i32 = arith.constant 0 : i32
    %c0_i32_0 = arith.constant 0 : i32
    %c0_i32_1 = arith.constant 0 : i32
    return %1, %c0_i32, %c0_i32_0 : i32, i32, i32
  }
}

</mosaic_0001>

<bundles_post_ra>
// kernel: _dict_loss_impl.1
= control target key start
LH: loop header
LB: loop body
LE: loop exit
PB: predicated region body
PF: predicated region fallthrough
CT: control target
= control target key end

     0   :  { %s475_s0 = inlined_call_operand.vmem [shape: s32[6], index: 0, kind: input, shape index: {}]   ;;  %s476_s1 = inlined_call_operand.vmem [shape: f32[12,8,128], index: 1, kind: input, shape index: {}]   ;;  %s477_s2 = inlined_call_operand.vmem [shape: f32[12,8,128], index: 2, kind: input, shape index: {}]   ;;  %s478_s3 = inlined_call_operand.vmem [shape: f32[4,8,128], index: 3, kind: output, shape index: {0}]   ;;  %s479_s4 = inlined_call_operand.vmem [shape: s32[4,8,128], index: 4, kind: output, shape index: {1}]  }
   0x1   :  { %s10_s17 = sshll.u32 %s475_s0, 4  ;;  %s11_s17 = int_to_ptr.vmem [resolvable:$true] %s10_s17 }
   0x2   :  { %s387_s18 = scalar_lea.vmem %s11_s17, 16  ;;  %p392_p1 = scmp.lt.s32.totalorder %s11_s17, %s11_s17 }
   0x3   :  { %p388_p0 = scmp.ne.s32.totalorder %s11_s17, %s387_s18  ;;  %p393_p2 = scmp.lt.s32.totalorder %s387_s18, %s387_s18 }
   0x5   :  { %p394_p3 = por %p393_p2, %p392_p1 }
   0x7   :  { %p395_p4 = pnand %p394_p3, %p388_p0 }
   0x9   :  { %398 = shalt.err (!%p395_p4)  }
   0xa   :  { %s409_s19 = smov [#allocation3]  }
   0xb   :  { %13 = dma.vmem_to_smem %s11_s17, 16, %s409_s19, [#allocation2] }
   0xc   :  { %403 = dma.done.wait [#allocation2], 16 }
   0xd   :  { %404 = vsyncadd [#allocation2], 4294967280 }
   0xe   :  { %15 = sfence }
   0xf   :  { %s442_s20 = smov 0  }
  0x10 LB: > { %s360_s0 = sadd.s32 4294967295, %s407_s20   ;;  %p364_p5 = scmp.ge.s32.totalorder %s407_s20, 1  ;;  %s407_s20 = sphi %s442_s20, %s21_s20  }
  0x11   : > { %p163_p6 = scmp.lt.s32.totalorder %s407_s20, 7 }
  0x13   : > { %p164_p7 = pnand %p364_p5, %p163_p6 }
  0x14   : > { %s365_s21 = sshll.u32 (!%p164_p7), %s360_s0, 1  ;;  %s209_s22 = sld [smem:[#allocation3 + %s360_s0]] (!%p164_p7) }
  0x15   : > { %167 = sbr.rel (%p164_p7) target bundleno = 62 (0x3e), region = 28  ;;  %p198_p8 = scmp.lt.s32.totalorder (!%p164_p7), %s365_s21, 11 }
  0x16   : > { %s215_s23 = sld [smem:[#allocation3 + %s360_s0]] (!%p164_p7)  ;;  %s371_s24 = sadd.s32 (!%p164_p7), 4294967295, %s360_s0 }
  0x17   : > { %p223_p9 = scmp.gt.s32.totalorder (!%p164_p7), %s371_s24, 0  ;;  %s221_s26 = sld [smem:[#allocation3 + %s360_s0]] (!%p164_p7) }
  0x18   : > { %p226_p12 = scmp.eq.s32.totalorder (!%p164_p7), %s360_s0, 0 }
  0x1a   : > { %p210_p10 = scmp.lt.s32.totalorder (!%p164_p7), %s209_s22, 3 }
  0x1c   : > { %s481_s21 = smov (!%p198_p8, %s365_s21), 11  ;;  %p216_p11 = scmp.lt.s32.totalorder %s215_s23, 3 }
  0x1d   : > { %s366_s25 = sshll.u32 %s481_s21, 3  ;;  %s483_s24 = smov (!%p223_p9, %s371_s24), 0 }
  0x1e   : > { %s201_s29 = scalar_lea.vmem %s476_s1, %s366_s25  ;;  %s207_s6 = scalar_lea.vmem %s477_s2, %s366_s25 }
  0x1f   : > { %s485_s22 = smov (!%p210_p10, %s209_s22), 3  ;;  %s487_s23 = smov (!%p216_p11, %s215_s23), 3 }
  0x20   : > { %s369_s7 = sshll.u32 %s485_s22, 3  ;;  %s225_s8 = sld [smem:[#allocation3 + %s483_s24]] }
  0x21   : > { %s459_s11 = scalar_lea.vmem %s478_s3, %s369_s7  ;;  %s370_s12 = sshll.u32 %s487_s23, 3 }
  0x22   : > { %s464_s15 = scalar_lea.vmem %s479_s4, %s370_s12 }
  0x26   : > { %p227_p13 = scmp.ne.s32.totalorder %s221_s26, %s225_s8 }
  0x28   : > { %p228_p0 = por %p227_p13, %p226_p12 }
  0x29   : > { %v410_v0 = vmov (%p228_p0), 0.0   ;;  %v411_v1 = vmov (%p228_p0), 0  }
  0x2a   : > { %231 = sbr.rel (!%p228_p0) target bundleno = 49 (0x31), region = 32  ;;  %232 = vst [vmem:[%s459_s11] sm:$0xff] (%p228_p0), %v410_v0  ;;  %233 = vst [vmem:[%s464_s15] sm:$0xff] (%p228_p0), %v411_v1 }
  0x31 PF: > { %v234_v2 = vld [vmem:[%s201_s29] sm:$0xff]  ;;  %v235_v3 = vld [vmem:[%s201_s29 + $0x8] sm:$0xff]  ;;  %vm412_vm2 = vmmov 1   ;;  %v413_v9 = vmov 0  }
  0x32   : > { %v236_v4 = vld [vmem:[%s207_s6] sm:$0xff]  ;;  %v237_v5 = vld [vmem:[%s207_s6 + $0x8] sm:$0xff] }
  0x33   : > { %vm238_vm0 = vcmp.ne.f32.partialorder %v236_v4, %v236_v4  ;;  %v242_v6 = vsub.f32 %v234_v2, %v236_v4  ;;  %vm239_vm1 = vcmp.ne.f32.partialorder %v237_v5, %v237_v5  ;;  %v243_v7 = vsub.f32 %v235_v3, %v237_v5  ;;  %v252_v13 = vld [vmem:[%s464_s15] sm:$0xff] }
  0x34   : > { %vm240_vm3 = vmxor %vm238_vm0, %vm412_vm2  ;;  %v246_v17 = vld [vmem:[%s459_s11] sm:$0xff] }
  0x35   : > { %vm241_vm4 = vmxor %vm239_vm1, %vm412_vm2  ;;  %v244_v8 = vsel %vm240_vm3, %v242_v6, 0.0  ;;  %v253_v10 = vsel %vm240_vm3, 1, %v413_v9 }
  0x36   : > { %v245_v11 = vsel %vm241_vm4, %v243_v7, 0.0  ;;  %v247_v12 = vmul.f32 %v244_v8, %v244_v8  ;;  %v254_v14 = vsel %vm241_vm4, 1, %v413_v9 }
  0x37   : > { %v248_v15 = vmul.f32 %v245_v11, %v245_v11  ;;  %v255_v16 = vadd.s32 %v254_v14, %v253_v10 }
  0x39   : > { %v249_v18 = vadd.f32 %v248_v15, %v247_v12  ;;  %v256_v19 = vadd.s32 %v255_v16, %v252_v13 }
  0x3b   : > { %v250_v20 = vadd.f32 %v249_v18, %v246_v17  ;;  %257 = vst [vmem:[%s464_s15] sm:$0xff] %v256_v19 }
  0x3d   : > { %251 = vst [vmem:[%s459_s11] sm:$0xff] %v250_v20 }
  0x3e PF: > { %s21_s20 = sadd.s32 1, %s407_s20  }
  0x3f   : > { %p18_p1 = scmp.ge.s32.totalorder %s21_s20, 8  }
  0x41   :  { %20 = sbr.rel (!%p18_p1) target bundleno = 16 (0x10), region = 77 }

</bundles_post_ra>
